<compile_context>
chip_gen: v6e
topology: v6e:2x2x1
jax: 0.10.0
libtpu: 0.0.40
codegen_flags: <defaults>
</compile_context>

<pallas_src>
import functools

import numpy as np
import jax
import jax.numpy as jnp
from jax.experimental import pallas as pl
from jax.experimental.pallas import tpu as pltpu


def _round_up(x, m):
    return ((x + m - 1) // m) * m


def _vq_kernel(x_ref, es_ref, et_ref, e2_ref, idx_ref, q_ref, sse_ref, *,
               tile_hw, hw_valid, hw_padded):
    """Quantize one (D, tile_hw) channel-major block of latents.

    x_ref   : (1, D, TN)     latent block (channels on sublanes, positions on lanes)
    es_ref  : (K_pad, D)     codebook in distance dtype (resident)
    et_ref  : (D, K_pad)     f32 transposed codebook for the exact gather (resident)
    e2_ref  : (K_pad, 1)     per-code squared norms (+1e30 sentinel on padding)
    idx_ref : (1, 1, TN)     nearest-code indices (lane-dense)
    q_ref   : (1, D, TN)     quantized block
    sse_ref : (1, 1, 1, 1)   this tile's partial sum of squared error
    """
    x = x_ref[0]                                    # (D, TN)
    x32 = x.astype(jnp.float32)
    es = es_ref[...]                                # (K_pad, D)
    et = et_ref[...]                                # (D, K_pad) f32
    e2 = e2_ref[...]                                # (K_pad, 1) f32
    k_pad = es.shape[0]

    # argmin_k |x - e_k|^2 == argmin_k (|e_k|^2 - 2 e_k.x); |x|^2 is constant
    # per column and dropped.  Distance matmul runs native bf16 on the MXU by
    # default (see wrapper); padded codes carry a +1e30 sentinel so they lose.
    s = jnp.dot(es, x.astype(es.dtype),
                preferred_element_type=jnp.float32)            # (K_pad, TN)
    score = e2 - 2.0 * s                                       # (K_pad, TN)

    # first-minimum argmin over the K (sublane) axis; single-hot even on ties.
    min_score = jnp.min(score, axis=0, keepdims=True)          # (1, TN)
    iota_k = jax.lax.broadcasted_iota(jnp.int32, score.shape, 0)
    inds = jnp.min(jnp.where(score == min_score, iota_k, k_pad), axis=0)
    inds = inds.astype(jnp.int32)                              # (TN,)
    one_hot = (iota_k == inds[None, :]).astype(jnp.float32)    # (K_pad, TN)

    # exact gather of selected codebook rows: q[d, n] = sum_k e_t[d,k]*1hot[k,n]
    q = jnp.dot(et, one_hot, preferred_element_type=jnp.float32)  # (D, TN)

    idx_ref[...] = inds[None, None, :]              # lane-dense store
    q_ref[...] = q[None].astype(q_ref.dtype)

    # per-tile partial SSE (padded spatial columns masked); reduced in wrapper.
    diff = q - x32
    if hw_valid < hw_padded:
        t = pl.program_id(1)
        col = t * tile_hw + jax.lax.broadcasted_iota(jnp.int32, diff.shape, 1)
        diff = jnp.where(col < hw_valid, diff, 0.0)
    sse_ref[...] = jnp.sum(diff * diff, keepdims=True)[None, None, :, :]


def vector_quantizer_forward(latents_nchw, embedding, beta=0.25, tile_hw=512,
                             distance_matmul_dtype=jnp.bfloat16):
    """Pallas implementation of VectorQuantizer.forward.

    latents_nchw : (B, D, H, W) float32
    embedding    : (K, D) float32 codebook
    Returns (encoding_inds (B*H*W, 1) int32, quantized (B, D, H, W), vq_loss).
    """
    B, D, H, W = latents_nchw.shape
    K, D_e = embedding.shape
    assert D_e == D
    HW = H * W

    # NCHW -> (B, D, HW): metadata-only reshape, no HBM traffic.
    x3 = latents_nchw.reshape(B, D, HW)

    # --- codebook: pad K to a lane multiple; sentinel |e|^2 so padded codes
    # (zero rows) never win the argmin.
    K_pad = _round_up(max(K, 128), 128)
    emb32 = embedding.astype(jnp.float32)
    if K_pad != K:
        e_pad = jnp.concatenate(
            [emb32, jnp.zeros((K_pad - K, D), jnp.float32)], axis=0)
    else:
        e_pad = emb32
    e2 = jnp.sum(emb32 * emb32, axis=1, keepdims=True)          # (K, 1) f32
    if K_pad != K:
        e2 = jnp.concatenate(
            [e2, jnp.full((K_pad - K, 1), 1e30, jnp.float32)], axis=0)
    e_score = e_pad.astype(distance_matmul_dtype)               # (K_pad, D)
    e_t = e_pad.T                                               # (D, K_pad) f32

    # --- tile_hw: multiple of 128, <= HW_pad, within VMEM budget, and a divisor
    # of HW_pad so no ragged tiles.  HW_pad == HW in the common case -> no pads.
    HW_pad = _round_up(HW, 128)
    tile = max(128, min(_round_up(int(tile_hw), 128), HW_pad))
    esize = np.dtype(distance_matmul_dtype).itemsize
    xsize = np.dtype(latents_nchw.dtype).itemsize

    def _vmem_est(tn):
        return (4 * K_pad * tn * 4                  # s, score, one_hot, int temps
                + 2 * D * tn * (2 * xsize)          # x, q blocks (double-buffered)
                + 2 * tn * 4                        # index block
                + 2 * K_pad * D * (esize + 4)       # resident codebooks (dbl-buf)
                + 2 * K_pad * 4)                    # |e|^2

    VMEM_BUDGET = 24 * 1024 * 1024                  # under the explicit 32 MiB limit
    while tile > 128 and _vmem_est(tile) > VMEM_BUDGET:
        tile -= 128
    while HW_pad % tile != 0:
        tile -= 128
    n_hw = HW_pad // tile

    x_in = x3
    if HW_pad != HW:
        x_in = jnp.concatenate(
            [x3, jnp.zeros((B, D, HW_pad - HW), x3.dtype)], axis=2)

    kernel = functools.partial(
        _vq_kernel, tile_hw=tile, hw_valid=HW, hw_padded=HW_pad)

    cost = pl.CostEstimate(
        flops=4 * B * HW_pad * K_pad * D,           # distance + one-hot matmuls
        transcendentals=0,
        bytes_accessed=(2 * B * HW_pad * D * xsize + K_pad * D * (esize + 4)
                        + K_pad * 4 + B * HW_pad * 4 + B * n_hw * 4),
    )

    idx_out, q_out, sse_out = pl.pallas_call(
        kernel,
        out_shape=(
            jax.ShapeDtypeStruct((B, 1, HW_pad), jnp.int32),
            jax.ShapeDtypeStruct((B, D, HW_pad), latents_nchw.dtype),
            jax.ShapeDtypeStruct((B, n_hw, 1, 1), jnp.float32),
        ),
        grid_spec=pltpu.PrefetchScalarGridSpec(
            num_scalar_prefetch=0,
            grid=(B, n_hw),
            in_specs=[
                pl.BlockSpec((1, D, tile), lambda b, t: (b, 0, t)),   # latents
                pl.BlockSpec((K_pad, D), lambda b, t: (0, 0)),        # codebook
                pl.BlockSpec((D, K_pad), lambda b, t: (0, 0)),        # codebook.T
                pl.BlockSpec((K_pad, 1), lambda b, t: (0, 0)),        # |e|^2
            ],
            out_specs=[
                pl.BlockSpec((1, 1, tile), lambda b, t: (b, 0, t)),   # indices
                pl.BlockSpec((1, D, tile), lambda b, t: (b, 0, t)),   # quantized
                pl.BlockSpec((1, 1, 1, 1), lambda b, t: (b, t, 0, 0)),# SSE partial
            ],
        ),
        compiler_params=pltpu.CompilerParams(
            dimension_semantics=("parallel", "parallel"),   # no cross-step deps
            vmem_limit_bytes=32 * 1024 * 1024,              # > v5e's 16 MiB default
        ),
        cost_estimate=cost,
    )(x_in, e_score, e_t, e2)

    if HW_pad != HW:
        idx_out = idx_out[:, :, :HW]
        q_out = q_out[:, :, :HW]

    idx = idx_out.reshape(B * HW, 1)                 # same ordering as NHWC flatten
    quantized_nchw = q_out.reshape(B, D, H, W)       # metadata-only reshape

    # losses: commitment = MSE(q.detach(), x); embedding = MSE(q, x.detach());
    # both equal SSE / (B*HW*D) in the forward value.
    mse = jnp.sum(sse_out) / jnp.float32(B * HW * D)
    vq_loss = mse * beta + mse

    # straight-through: x + (q - x).detach() == q numerically in the forward.
    return idx, quantized_nchw, vq_loss


def make_embedding(key, num_embeddings, embedding_dim):
    # matches nn.Embedding(...).weight.data.uniform_(-1/K, 1/K)
    lim = 1.0 / num_embeddings
    return jax.random.uniform(
        key, (num_embeddings, embedding_dim), jnp.float32, minval=-lim, maxval=lim)


if __name__ == "__main__":
    # small shapes consistent with the module: embedding_dim == channel dim
    B, D, H, W = 2, 8, 16, 16           # latents NCHW
    K = 16                              # num_embeddings
    beta = 0.25

    key = jax.random.PRNGKey(0)
    k_x, k_e = jax.random.split(key)
    latents = jax.random.normal(k_x, (B, D, H, W), jnp.float32)
    embedding = make_embedding(k_e, K, D)

    # pure-JAX f32 reference mirroring the torch forward
    x_flat = jnp.transpose(latents, (0, 2, 3, 1)).reshape(-1, D)
    dist = (jnp.sum(x_flat ** 2, 1, keepdims=True)
            + jnp.sum(embedding ** 2, 1)[None, :]
            - 2.0 * x_flat @ embedding.T)
    ref_idx = jnp.argmin(dist, axis=1)
    ref_q = embedding[ref_idx]
    ref_mse = jnp.mean((ref_q - x_flat) ** 2)
    ref_loss = ref_mse * beta + ref_mse

    # 1) exact-parity run (f32 distance matmul)
    fwd_f32 = jax.jit(functools.partial(
        vector_quantizer_forward, beta=beta, distance_matmul_dtype=jnp.float32))
    idx, quantized, vq_loss = fwd_f32(latents, embedding)
    jax.block_until_ready((idx, quantized, vq_loss))

    assert idx.shape == (B * H * W, 1)
    assert quantized.shape == (B, D, H, W)
    assert bool(jnp.all(idx[:, 0] == ref_idx))
    q_flat = jnp.transpose(quantized, (0, 2, 3, 1)).reshape(-1, D)
    assert bool(jnp.allclose(q_flat, ref_q, atol=1e-5))
    assert bool(jnp.allclose(vq_loss, ref_loss, atol=1e-5, rtol=1e-5))

    # 2) default fast path (bf16 distance matmul): near-ties may flip indices vs
    # the f32 reference, so check self-consistency instead of exact parity.
    fwd_bf16 = jax.jit(functools.partial(vector_quantizer_forward, beta=beta))
    idx_b, quant_b, loss_b = fwd_bf16(latents, embedding)
    jax.block_until_ready((idx_b, quant_b, loss_b))

    qb_flat = jnp.transpose(quant_b, (0, 2, 3, 1)).reshape(-1, D)
    sel = embedding[idx_b[:, 0]]
    assert bool(jnp.all((idx_b[:, 0] >= 0) & (idx_b[:, 0] < K)))
    assert bool(jnp.allclose(qb_flat, sel, atol=1e-5))
    mse_b = jnp.mean((sel - x_flat) ** 2)
    assert bool(jnp.allclose(loss_b, mse_b * beta + mse_b, atol=1e-5, rtol=1e-5))

    print("KERNEL_OK")
</pallas_src>

<mosaic_0001>
module attributes {stable_mosaic.version = 11 : i64} {
  func.func @_vq_kernel(%arg0: i32, %arg1: i32, %arg2: memref<1x8x256xf32, #tpu.memory_space<vmem>>, %arg3: memref<128x8xf32, #tpu.memory_space<vmem>>, %arg4: memref<8x128xf32, #tpu.memory_space<vmem>>, %arg5: memref<128x1xf32, #tpu.memory_space<vmem>>, %arg6: memref<1x1x256xi32, #tpu.memory_space<vmem>>, %arg7: memref<1x8x256xf32, #tpu.memory_space<vmem>>, %arg8: memref<1x1x1x1xf32, #tpu.memory_space<vmem>>) attributes {dimension_semantics = [#tpu.dimension_semantics<parallel>, #tpu.dimension_semantics<parallel>], iteration_bounds = array<i64: 2, 1>, scalar_prefetch = 0 : i64, scratch_operands = 0 : i64, tpu.core_type = #tpu.core_type<tc>, window_params = [{transform_indices = @transform_0, window_bounds = array<i64: 1, 8, 256>}, {pipeline_mode = #tpu.pipeline_mode<synchronous>, transform_indices = @transform_1, window_bounds = array<i64: 128, 8>}, {pipeline_mode = #tpu.pipeline_mode<synchronous>, transform_indices = @transform_2, window_bounds = array<i64: 8, 128>}, {pipeline_mode = #tpu.pipeline_mode<synchronous>, transform_indices = @transform_3, window_bounds = array<i64: 128, 1>}, {transform_indices = @transform_4, window_bounds = array<i64: 1, 1, 256>}, {transform_indices = @transform_5, window_bounds = array<i64: 1, 8, 256>}, {transform_indices = @transform_6, window_bounds = array<i64: 1, 1, 1, 1>}]} {
    %c0 = arith.constant 0 : index
    %c0_0 = arith.constant 0 : index
    %c0_1 = arith.constant 0 : index
    %0 = vector.load %arg2[%c0, %c0_0, %c0_1] : memref<1x8x256xf32, #tpu.memory_space<vmem>>, vector<1x8x256xf32>
    %1 = vector.shape_cast %0 : vector<1x8x256xf32> to vector<8x256xf32>
    %c0_2 = arith.constant 0 : index
    %c0_3 = arith.constant 0 : index
    %2 = vector.load %arg3[%c0_2, %c0_3] : memref<128x8xf32, #tpu.memory_space<vmem>>, vector<128x8xf32>
    %c0_4 = arith.constant 0 : index
    %c0_5 = arith.constant 0 : index
    %3 = vector.load %arg4[%c0_4, %c0_5] : memref<8x128xf32, #tpu.memory_space<vmem>>, vector<8x128xf32>
    %c0_6 = arith.constant 0 : index
    %c0_7 = arith.constant 0 : index
    %4 = vector.load %arg5[%c0_6, %c0_7] : memref<128x1xf32, #tpu.memory_space<vmem>>, vector<128x1xf32>
    %cst = arith.constant dense<0.000000e+00> : vector<128x256xf32>
    %5 = tpu.matmul %2, %1, %cst {dimension_numbers = #tpu.dot_dimension_numbers<[1], [0], [0], [1], [0, 0, 1, 1], [], []>} : vector<128x8xf32>, vector<8x256xf32>, vector<128x256xf32> -> vector<128x256xf32>
    %cst_8 = arith.constant 2.000000e+00 : f32
    %6 = vector.broadcast %cst_8 : f32 to vector<128x256xf32>
    %7 = arith.mulf %6, %5 : vector<128x256xf32>
    %8 = vector.broadcast %4 : vector<128x1xf32> to vector<128x256xf32>
    %9 = arith.subf %8, %7 : vector<128x256xf32>
    %cst_9 = arith.constant dense<0x7F800000> : vector<256xf32>
    %10 = vector.multi_reduction <minimumf>, %9, %cst_9 [0] : vector<128x256xf32> to vector<256xf32>
    %11 = vector.shape_cast %10 : vector<256xf32> to vector<1x256xf32>
    %12 = tpu.iota {dimensions = array<i32: 0>} : vector<128x256xi32>
    %13 = vector.broadcast %11 : vector<1x256xf32> to vector<128x256xf32>
    %14 = arith.cmpf oeq, %9, %13 : vector<128x256xf32>
    %c128_i32 = arith.constant 128 : i32
    %15 = vector.broadcast %c128_i32 : i32 to vector<128x256xi32>
    %16 = arith.select %14, %12, %15 : vector<128x256xi1>, vector<128x256xi32>
    %cst_10 = arith.constant dense<2147483647> : vector<256xi32>
    %17 = vector.multi_reduction <minsi>, %16, %cst_10 [0] : vector<128x256xi32> to vector<256xi32>
    %18 = vector.shape_cast %17 : vector<256xi32> to vector<1x256xi32>
    %19 = vector.broadcast %18 : vector<1x256xi32> to vector<128x256xi32>
    %20 = arith.cmpi eq, %12, %19 : vector<128x256xi32>
    %21 = arith.extui %20 : vector<128x256xi1> to vector<128x256xi32>
    %22 = arith.sitofp %21 : vector<128x256xi32> to vector<128x256xf32>
    %cst_11 = arith.constant dense<0.000000e+00> : vector<8x256xf32>
    %23 = tpu.matmul %3, %22, %cst_11 {dimension_numbers = #tpu.dot_dimension_numbers<[1], [0], [0], [1], [0, 0, 1, 1], [], []>} : vector<8x128xf32>, vector<128x256xf32>, vector<8x256xf32> -> vector<8x256xf32>
    %24 = vector.shape_cast %17 : vector<256xi32> to vector<1x1x256xi32>
    %c0_12 = arith.constant 0 : index
    %c0_13 = arith.constant 0 : index
    %c0_14 = arith.constant 0 : index
    %25 = vector.load %arg6[%c0_12, %c0_13, %c0_14] : memref<1x1x256xi32, #tpu.memory_space<vmem>>, vector<1x1x256xi32>
    tpu.vector_store %arg6[%c0_12, %c0_13, %c0_14], %24 {strides = array<i32>} : memref<1x1x256xi32, #tpu.memory_space<vmem>>, vector<1x1x256xi32>,
    %26 = vector.shape_cast %23 : vector<8x256xf32> to vector<1x8x256xf32>
    %c0_15 = arith.constant 0 : index
    %c0_16 = arith.constant 0 : index
    %c0_17 = arith.constant 0 : index
    %27 = vector.load %arg7[%c0_15, %c0_16, %c0_17] : memref<1x8x256xf32, #tpu.memory_space<vmem>>, vector<1x8x256xf32>
    tpu.vector_store %arg7[%c0_15, %c0_16, %c0_17], %26 {strides = array<i32>} : memref<1x8x256xf32, #tpu.memory_space<vmem>>, vector<1x8x256xf32>,
    %28 = arith.subf %23, %1 : vector<8x256xf32>
    %29 = arith.mulf %28, %28 : vector<8x256xf32>
    %30 = vector.shape_cast %29 : vector<8x256xf32> to vector<1x8x256xf32>
    %cst_18 = arith.constant dense<0.000000e+00> : vector<1xf32>
    %31 = vector.multi_reduction <add>, %30, %cst_18 [1, 2] : vector<1x8x256xf32> to vector<1xf32>
    %32 = vector.shape_cast %31 : vector<1xf32> to vector<1x1x1xf32>
    %33 = vector.extract %32[0, 0, 0] : f32 from vector<1x1x1xf32>
    %34 = vector.broadcast %33 : f32 to vector<1x1xf32>
    %35 = vector.shape_cast %34 : vector<1x1xf32> to vector<1x1x1x1xf32>
    %c0_19 = arith.constant 0 : index
    %c0_20 = arith.constant 0 : index
    %c0_21 = arith.constant 0 : index
    %c0_22 = arith.constant 0 : index
    %36 = vector.load %arg8[%c0_19, %c0_20, %c0_21, %c0_22] : memref<1x1x1x1xf32, #tpu.memory_space<vmem>>, vector<1x1x1x1xf32>
    tpu.vector_store %arg8[%c0_19, %c0_20, %c0_21, %c0_22], %35 {strides = array<i32>} : memref<1x1x1x1xf32, #tpu.memory_space<vmem>>, vector<1x1x1x1xf32>,
    return
  }
  func.func @transform_0(%arg0: i32, %arg1: i32) -> (i32, i32, i32) {
    %c0_i32 = arith.constant 0 : i32
    %c0_i32_0 = arith.constant 0 : i32
    return %arg0, %c0_i32, %arg1 : i32, i32, i32
  }
  func.func @transform_1(%arg0: i32, %arg1: i32) -> (i32, i32) {
    %c0_i32 = arith.constant 0 : i32
    %c0_i32_0 = arith.constant 0 : i32
    %c0_i32_1 = arith.constant 0 : i32
    return %c0_i32, %c0_i32_0 : i32, i32
  }
  func.func @transform_2(%arg0: i32, %arg1: i32) -> (i32, i32) {
    %c0_i32 = arith.constant 0 : i32
    %c0_i32_0 = arith.constant 0 : i32
    %c0_i32_1 = arith.constant 0 : i32
    return %c0_i32, %c0_i32_0 : i32, i32
  }
  func.func @transform_3(%arg0: i32, %arg1: i32) -> (i32, i32) {
    %c0_i32 = arith.constant 0 : i32
    %c0_i32_0 = arith.constant 0 : i32
    %c0_i32_1 = arith.constant 0 : i32
    return %c0_i32, %c0_i32_0 : i32, i32
  }
  func.func @transform_4(%arg0: i32, %arg1: i32) -> (i32, i32, i32) {
    %c0_i32 = arith.constant 0 : i32
    %c0_i32_0 = arith.constant 0 : i32
    return %arg0, %c0_i32, %arg1 : i32, i32, i32
  }
  func.func @transform_5(%arg0: i32, %arg1: i32) -> (i32, i32, i32) {
    %c0_i32 = arith.constant 0 : i32
    %c0_i32_0 = arith.constant 0 : i32
    return %arg0, %c0_i32, %arg1 : i32, i32, i32
  }
  func.func @transform_6(%arg0: i32, %arg1: i32) -> (i32, i32, i32, i32) {
    %c0_i32 = arith.constant 0 : i32
    %c0_i32_0 = arith.constant 0 : i32
    %c0_i32_1 = arith.constant 0 : i32
    return %arg0, %arg1, %c0_i32, %c0_i32_0 : i32, i32, i32, i32
  }
}

</mosaic_0001>

<bundles_post_ra>
// kernel: vector_quantizer_forward.1
= control target key start
LH: loop header
LB: loop body
LE: loop exit
PB: predicated region body
PF: predicated region fallthrough
CT: control target
= control target key end

     0   :  { %12 = vsyncpa [#allocation3], 0  ;;  %s2234_s0 = inlined_call_operand.vmem [shape: f32[2,8,256], index: 0, kind: input, shape index: {}]   ;;  %s2235_s1 = inlined_call_operand.vmem [shape: f32[128,8], index: 1, kind: input, shape index: {}]   ;;  %s2236_s2 = inlined_call_operand.vmem [shape: f32[8,128], index: 2, kind: input, shape index: {}]   ;;  %s2237_s3 = inlined_call_operand.vmem [shape: f32[128,1], index: 3, kind: input, shape index: {}]   ;;  %s2238_s4 = inlined_call_operand.hbm [shape: s32[2,1,256], index: 4, kind: output, shape index: {0}]   ;;  %s2239_s5 = inlined_call_operand.vmem [shape: f32[2,8,256], index: 5, kind: output, shape index: {1}]   ;;  %s2240_s6 = inlined_call_operand.vmem [shape: f32[2,1,1,1], index: 6, kind: output, shape index: {2}]  }
   0x1   :  { %14 = vsyncpa [#allocation3 + $0x1], 0  ;;  %s1574_s21 = smov 0   ;;  %s1576_s22 = smov 0  }
   0x2   :  { %s1578_s23 = smov 0   ;;  %s1580_s24 = smov 0  }
   0x3   :  { %s1582_s25 = smov 0   ;;  %s1584_s26 = smov 0  }
   0x4 LB: > { %s1295_s27 = sadd.s32 4294967295, %s1532_s26   ;;  %s1296_s28 = sadd.s32 4294967294, %s1532_s26   ;;  %s1532_s26 = sphi %s1584_s26, %s20_s26   ;;  %s1528_s25 = sphi %s1582_s25, %s2247_s25   ;;  %s1524_s24 = sphi %s1580_s24, %s2246_s24   ;;  %s1520_s23 = sphi %s1578_s23, %s2245_s23   ;;  %s1516_s22 = sphi %s1576_s22, %s2244_s22   ;;  %s1512_s21 = sphi %s1574_s21, %s2243_s21  }
   0x5   : > { %s32_s29 = sadd.s32 1, %s1528_s25  ;;  %s132_s30 = sadd.s32 1, %s1520_s23 }
   0x6   : > { %p34_p0 = scmp.ge.s32.totalorder %s32_s29, 2  ;;  %p142_p1 = scmp.ne.s32.totalorder %s1520_s23, %s1516_s22 }
   0x7   : > { %p143_p2 = scmp.eq.s32.totalorder %s1295_s27, 1  ;;  %p148_p3 = scmp.ne.s32.totalorder %s1516_s22, %s1512_s21 }
   0x8   : > { %s2249_s29 = smov (%p34_p0, %s32_s29), 0  ;;  %p149_p5 = scmp.eq.s32.totalorder %s1296_s28, 1 }
   0x9   : > { %p1614_p4 = por %p143_p2, %p142_p1  ;;  %s127_s8 = ssub.s32 %s1528_s25, %s2249_s29 }
   0xa   : > { %p1299_p6 = scmp.ge.s32.totalorder %s1532_s26, 1  ;;  %p130_p7 = scmp.eq.s32.totalorder %s127_s8, 0 }
   0xb   : > { %p1621_p8 = por %p149_p5, %p148_p3  ;;  %p245_p9 = scmp.lt.s32.totalorder %s1532_s26, 3 }
   0xc   : > { %s1627_s10 = scalar_select %p130_p7, %s1520_s23, %s132_s30  }
   0xd   : > { %p246_p10 = pnand %p1299_p6, %p245_p9 }
   0xe   : > { %p295_p11 = scmp.lt.s32.totalorder (!%p246_p10), %s1524_s24, 1  ;;  %s272_s20 = sand.u32 (!%p246_p10), 1, %s1516_s22  }
   0xf   : > { %249 = sbr.rel (%p246_p10) target bundleno = 785 (0x311), region = 36  ;;  %s2088_s27 = sshll.u32 (!%p246_p10), %s272_s20, 1 }
  0x10   : > { %s274_s28 = scalar_lea.vmem (!%p246_p10), [#allocation2], %s2088_s27  ;;  %s1392_s16 = sshll.u32 (!%p246_p10), %s1524_s24, 5 }
  0x11   : > { %s1147_s19 = scalar_lea.hbm (!%p246_p10), %s2238_s4, %s1392_s16  ;;  %s1118_s30 = scalar_lea.sflag (!%p246_p10), [#allocation3], %s272_s20 }
  0x12   : > { %s1538_s13 = smov (!%p246_p10), [#allocation2]  }
  0x13   : > { %s1460_s14 = sshll.u32 (!%p246_p10), %s1538_s13, 4  ;;  %s1461_s14 = int_to_ptr.vmem [resolvable:$false] %s1460_s14 }
  0x14   : > { %v1534_v0 = vmov 0.0   ;;  %s1633_s11 = scalar_select %p295_p11, %s1524_s24, 1  ;;  %v1535_v1 = vmov 0   ;;  %v323_v2 = vld [vmem:[%s2235_s1] sm:$0xff]  ;;  %vm356_vm0 = vcmask 64512   ;;  %v342_v6 = vld [vmem:[%s2237_s3 + $0x10] sm:$0xff] }
  0x15   : > { %469 = vmatprep.mubr.f32.mxu0 %v1534_v0  ;;  %1071 = vmatprep.mubr.f32.mxu1 %v1534_v0  ;;  %v340_v3 = vld [vmem:[%s2237_s3] sm:$0xff]  ;;  %v341_v7 = vld [vmem:[%s2237_s3 + $0x8] sm:$0xff]  ;;  %v343_v8 = vld [vmem:[%s2237_s3 + $0x18] sm:$0xff] }
  0x16   : > { %1454 = vset.pattern.permute.xlu0 %v1535_v1  ;;  %1455 = vset.pattern.permute.xlu1 %v1535_v1  ;;  %s1390_s12 = sshll.u32 %s1633_s11, 4  ;;  %v324_v9 = vld [vmem:[%s2235_s1 + $0x8] sm:$0xff]  ;;  %v344_v10 = vld [vmem:[%s2237_s3 + $0x20] sm:$0xff]  ;;  %v325_v12 = vld [vmem:[%s2235_s1 + $0x10] sm:$0xff] }
  0x17   : > { %s302_s15 = scalar_lea.vmem %s2234_s0, %s1390_s12  ;;  %600 = vperm.xlu0 %1454, %v340_v3   ;;  %610 = vperm.xlu1 %1455, %v342_v6   ;;  %v345_v11 = vld [vmem:[%s2237_s3 + $0x28] sm:$0xff]  ;;  %v346_v13 = vld [vmem:[%s2237_s3 + $0x30] sm:$0xff]  ;;  %v347_v14 = vld [vmem:[%s2237_s3 + $0x38] sm:$0xff] }
  0x18   : > { %v1647_v4 = vld [vmem:[%s302_s15 + $0x8] sm:$0xff]  ;;  %v1649_v5 = vld [vmem:[%s302_s15] sm:$0xff]  ;;  %v326_v15 = vld [vmem:[%s2235_s1 + $0x18] sm:$0xff]  ;;  %s313_s15 = scalar_lea.vmem %s2239_s5, %s1390_s12  ;;  %s1149_s12 = sshll.u32 %s274_s28, 4  ;;  %s1150_s12 = int_to_ptr.vmem [resolvable:$true] %s1149_s12 }
  0x19   : > { %435 = vmatprep.subr.mxu0 %v1647_v4  ;;  %v348_v16 = vld [vmem:[%s2237_s3 + $0x40] sm:$0xff]  ;;  %v349_v17 = vld [vmem:[%s2237_s3 + $0x48] sm:$0xff]  ;;  %v350_v19 = vld [vmem:[%s2237_s3 + $0x50] sm:$0xff]  ;;  %s1456_s8 = scalar_lea.vmem %s1150_s12, 32  ;;  %p1463_p1 = scmp.lt.s32.totalorder %s1150_s12, %s1461_s14 }
  0x1a   : > { %436 = vmatpush1.msra.mxu0 %v1649_v5  ;;  %v327_v18 = vld [vmem:[%s2235_s1 + $0x20] sm:$0xff]  ;;  %v351_v20 = vld [vmem:[%s2237_s3 + $0x58] sm:$0xff]  ;;  %v328_v21 = vld [vmem:[%s2235_s1 + $0x28] sm:$0xff]  ;;  %p1457_p12 = scmp.ne.s32.totalorder %s1150_s12, %s1456_s8 }
  0x1b   : > { %1305 = vmatmul.mubr.msk.f32.vlgmr.msra.gmra.mxu0 %vm356_vm0, %v323_v2  ;;  %605 = vperm.xlu0 %1454, %v341_v7   ;;  %v352_v22 = vld [vmem:[%s2237_s3 + $0x60] sm:$0xff]  ;;  %v353_v23 = vld [vmem:[%s2237_s3 + $0x68] sm:$0xff]  ;;  %v329_v24 = vld [vmem:[%s2235_s1 + $0x30] sm:$0xff] }
  0x1c   : > { %475 = vmatprep.mubr.f32.mxu0 %v1534_v0  ;;  %615 = vperm.xlu1 %1455, %v343_v8   ;;  %v354_v25 = vld [vmem:[%s2237_s3 + $0x70] sm:$0xff]  ;;  %v355_v26 = vld [vmem:[%s2237_s3 + $0x78] sm:$0xff]  ;;  %v331_v28 = vld [vmem:[%s2235_s1 + $0x40] sm:$0xff]  ;;  %p1458_p13 = pnand %p1457_p12, %p1614_p4 }
  0x1d   : > { %v330_v27 = vld [vmem:[%s2235_s1 + $0x38] sm:$0xff]  ;;  %v332_v29 = vld [vmem:[%s2235_s1 + $0x48] sm:$0xff]  ;;  %v333_v30 = vld [vmem:[%s2235_s1 + $0x50] sm:$0xff] }
  0x1e   : > { %v334_v31 = vld [vmem:[%s2235_s1 + $0x58] sm:$0xff]  ;;  %v335_v32 = vld [vmem:[%s2235_s1 + $0x60] sm:$0xff]  ;;  %v336_v33 = vld [vmem:[%s2235_s1 + $0x68] sm:$0xff]  ;;  %p1459_p0 = pneg %p1458_p13 }
  0x1f   : > { %1306 = vmatmul.mubr.msk.f32.gmra.mxu0 %vm356_vm0, %v324_v9  ;;  %620 = vperm.xlu0 %1454, %v344_v10   ;;  %v337_v34 = vld [vmem:[%s2235_s1 + $0x70] sm:$0xff]  ;;  %v338_v35 = vld [vmem:[%s2235_s1 + $0x78] sm:$0xff] }
  0x20   : > { %481 = vmatprep.mubr.f32.mxu0 %v1534_v0  ;;  %625 = vperm.xlu1 %1455, %v345_v11  }
  0x23   : > { %1307 = vmatmul.mubr.msk.f32.gmra.mxu0 %vm356_vm0, %v325_v12  ;;  %630 = vperm.xlu0 %1454, %v346_v13  }
  0x24   : > { %487 = vmatprep.mubr.f32.mxu0 %v1534_v0  ;;  %635 = vperm.xlu1 %1455, %v347_v14  }
  0x27   : > { %1308 = vmatmul.mubr.msk.f32.gmra.mxu0 %vm356_vm0, %v326_v15  ;;  %640 = vperm.xlu0 %1454, %v348_v16  }
  0x28   : > { %493 = vmatprep.mubr.f32.mxu0 %v1534_v0  ;;  %645 = vperm.xlu1 %1455, %v349_v17  }
  0x2b   : > { %1309 = vmatmul.mubr.msk.f32.gmra.mxu0 %vm356_vm0, %v327_v18  ;;  %650 = vperm.xlu0 %1454, %v350_v19  }
  0x2c   : > { %499 = vmatprep.mubr.f32.mxu0 %v1534_v0  ;;  %655 = vperm.xlu1 %1455, %v351_v20  }
  0x2f   : > { %1310 = vmatmul.mubr.msk.f32.gmra.mxu0 %vm356_vm0, %v328_v21  ;;  %660 = vperm.xlu0 %1454, %v352_v22  }
  0x30   : > { %505 = vmatprep.mubr.f32.mxu0 %v1534_v0  ;;  %665 = vperm.xlu1 %1455, %v353_v23  }
  0x33   : > { %1311 = vmatmul.mubr.msk.f32.gmra.mxu0 %vm356_vm0, %v329_v24  ;;  %670 = vperm.xlu0 %1454, %v354_v25  }
  0x34   : > { %511 = vmatprep.mubr.f32.mxu0 %v1534_v0  ;;  %675 = vperm.xlu1 %1455, %v355_v26  }
  0x37   : > { %1312 = vmatmul.mubr.msk.f32.gmra.mxu0 %vm356_vm0, %v330_v27 }
  0x38   : > { %517 = vmatprep.mubr.f32.mxu0 %v1534_v0 }
  0x3b   : > { %1313 = vmatmul.mubr.msk.f32.gmra.mxu0 %vm356_vm0, %v331_v28 }
  0x3c   : > { %523 = vmatprep.mubr.f32.mxu0 %v1534_v0 }
  0x3f   : > { %1314 = vmatmul.mubr.msk.f32.gmra.mxu0 %vm356_vm0, %v332_v29 }
  0x40   : > { %529 = vmatprep.mubr.f32.mxu0 %v1534_v0 }
  0x43   : > { %1315 = vmatmul.mubr.msk.f32.gmra.mxu0 %vm356_vm0, %v333_v30 }
  0x44   : > { %535 = vmatprep.mubr.f32.mxu0 %v1534_v0 }
  0x47   : > { %1316 = vmatmul.mubr.msk.f32.gmra.mxu0 %vm356_vm0, %v334_v31 }
  0x48   : > { %541 = vmatprep.mubr.f32.mxu0 %v1534_v0 }
  0x4b   : > { %1317 = vmatmul.mubr.msk.f32.gmra.mxu0 %vm356_vm0, %v335_v32 }
  0x4c   : > { %547 = vmatprep.mubr.f32.mxu0 %v1534_v0 }
  0x4f   : > { %1318 = vmatmul.mubr.msk.f32.gmra.mxu0 %vm356_vm0, %v336_v33 }
  0x50   : > { %553 = vmatprep.mubr.f32.mxu0 %v1534_v0 }
  0x53   : > { %1319 = vmatmul.mubr.msk.f32.gmra.mxu0 %vm356_vm0, %v337_v34 }
  0x54   : > { %559 = vmatprep.mubr.f32.mxu0 %v1534_v0 }
  0x57   : > { %1320 = vmatmul.mubr.msk.f32.gmra.mxu0 %vm356_vm0, %v338_v35 }
  0x92   : > { %v601_v46 = vpop.permute.xlu0 %600  ;;  %v611_v47 = vpop.permute.xlu1 %610 }
  0x96   : > { %v606_v51 = vpop.permute.xlu0 %605 }
  0x97   : > { %v616_v52 = vpop.permute.xlu1 %615 }
  0x9a   : > { %v621_v55 = vpop.permute.xlu0 %620 }
  0x9b   : > { %v626_v57 = vpop.permute.xlu1 %625 }
  0x9e   : > { %v631_v60 = vpop.permute.xlu0 %630 }
  0x9f   : > { %v636_v62 = vpop.permute.xlu1 %635 }
  0xa2   : > { %v641_v9 = vpop.permute.xlu0 %640 }
  0xa3   : > { %v646_v17 = vpop.permute.xlu1 %645 }
  0xa6   : > { %v651_v35 = vpop.permute.xlu0 %650 }
  0xdb   : > { %v471_v36 = vpop.f32.mrf.mxu0 }
  0xdc   : > { %v566_v3 = vmul.f32 2.0, %v471_v36 }
  0xdd   : > { %v473_v37 = vpop.f32.mrf.mxu0 }
  0xde   : > { %v567_v11 = vmul.f32 2.0, %v473_v37  ;;  %v1778_v22 = vsub.f32 %v601_v46, %v566_v3 }
  0xdf   : > { %v477_v38 = vpop.f32.mrf.mxu0 }
  0xe0   : > { %v568_v13 = vmul.f32 2.0, %v477_v38  ;;  %v1786_v27 = vsub.f32 %v601_v46, %v567_v11 }
  0xe1   : > { %v479_v39 = vpop.f32.mrf.mxu0 }
  0xe2   : > { %v569_v14 = vmul.f32 2.0, %v479_v39  ;;  %v1790_v31 = vsub.f32 %v606_v51, %v568_v13 }
  0xe3   : > { %v483_v40 = vpop.f32.mrf.mxu0 }
  0xe4   : > { %v570_v0 = vmul.f32 2.0, %v483_v40  ;;  %v1792_v32 = vsub.f32 %v606_v51, %v569_v14 }
  0xe5   : > { %v485_v41 = vpop.f32.mrf.mxu0 }
  0xe6   : > { %v571_v2 = vmul.f32 2.0, %v485_v41  ;;  %v1774_v15 = vsub.f32 %v611_v47, %v570_v0 }
  0xe7   : > { %v489_v42 = vpop.f32.mrf.mxu0 }
  0xe8   : > { %v572_v6 = vmul.f32 2.0, %v489_v42  ;;  %v1776_v19 = vsub.f32 %v611_v47, %v571_v2  ;;  %v710_v33 = vmin.f32 %v1778_v22, %v1774_v15  ;;  %v661_v2 = vpop.permute.xlu0 %660 }
  0xe9   : > { %v491_v43 = vpop.f32.mrf.mxu0 }
  0xea   : > { %v573_v7 = vmul.f32 2.0, %v491_v43  ;;  %v1780_v23 = vsub.f32 %v616_v52, %v572_v6  ;;  %v731_v37 = vmin.f32 %v1786_v27, %v1776_v19 }
  0xeb   : > { %v495_v44 = vpop.f32.mrf.mxu0 }
  0xec   : > { %v574_v8 = vmul.f32 2.0, %v495_v44  ;;  %v1782_v24 = vsub.f32 %v616_v52, %v573_v7  ;;  %v711_v41 = vmin.f32 %v1790_v31, %v1780_v23  ;;  %v656_v44 = vpop.permute.xlu1 %655 }
  0xed   : > { %v497_v45 = vpop.f32.mrf.mxu0 }
  0xee   : > { %v575_v12 = vmul.f32 2.0, %v497_v45  ;;  %v1784_v25 = vsub.f32 %v621_v55, %v574_v8  ;;  %v732_v42 = vmin.f32 %v1792_v32, %v1782_v24 }
  0xef   : > { %v501_v48 = vpop.f32.mrf.mxu0 }
  0xf0   : > { %v576_v16 = vmul.f32 2.0, %v501_v48  ;;  %v1788_v28 = vsub.f32 %v621_v55, %v575_v12  ;;  %v712_v43 = vmin.f32 %v710_v33, %v1784_v25  ;;  %v666_v11 = vpop.permute.xlu1 %665 }
  0xf1   : > { %v503_v49 = vpop.f32.mrf.mxu0 }
  0xf2   : > { %v577_v20 = vmul.f32 2.0, %v503_v49  ;;  %v1796_v34 = vsub.f32 %v626_v57, %v576_v16  ;;  %v733_v47 = vmin.f32 %v731_v37, %v1788_v28 }
  0xf3   : > { %v507_v50 = vpop.f32.mrf.mxu0 }
  0xf4   : > { %v578_v21 = vmul.f32 2.0, %v507_v50  ;;  %v1800_v38 = vsub.f32 %v626_v57, %v577_v20  ;;  %v713_v51 = vmin.f32 %v711_v41, %v1796_v34  ;;  %v671_v41 = vpop.permute.xlu0 %670 }
  0xf5   : > { %v509_v53 = vpop.f32.mrf.mxu0 }
  0xf6   : > { %v579_v29 = vmul.f32 2.0, %v509_v53  ;;  %v1802_v39 = vsub.f32 %v631_v60, %v578_v21 }
  0xf7   : > { %v513_v54 = vpop.f32.mrf.mxu0 }
  0xf8   : > { %v580_v30 = vmul.f32 2.0, %v513_v54  ;;  %v1810_v48 = vsub.f32 %v631_v60, %v579_v29  ;;  %v714_v57 = vmin.f32 %v712_v43, %v1802_v39 }
  0xf9   : > { %v515_v56 = vpop.f32.mrf.mxu0 }
  0xfa   : > { %v581_v40 = vmul.f32 2.0, %v515_v56  ;;  %v1812_v49 = vsub.f32 %v636_v62, %v580_v30  ;;  %v734_v56 = vmin.f32 %v732_v42, %v1800_v38  ;;  %v735_v8 = vmin.f32 %v733_v47, %v1810_v48 }
  0xfb   : > { %v519_v58 = vpop.f32.mrf.mxu0 }
  0xfc   : > { %v582_v45 = vmul.f32 2.0, %v519_v58  ;;  %v1817_v0 = vsub.f32 %v636_v62, %v581_v40 }
  0xfd   : > { %v521_v59 = vpop.f32.mrf.mxu0 }
  0xfe   : > { %v583_v52 = vmul.f32 2.0, %v521_v59  ;;  %v1819_v3 = vsub.f32 %v641_v9, %v582_v45  ;;  %v715_v59 = vmin.f32 %v713_v51, %v1812_v49  ;;  %v676_v51 = vpop.permute.xlu1 %675 }
  0xff   : > { %v525_v61 = vpop.f32.mrf.mxu0 }
 0x100   : > { %v584_v50 = vmul.f32 2.0, %v525_v61  ;;  %v1825_v12 = vsub.f32 %v641_v9, %v583_v52 }
 0x101   : > { %v527_v63 = vpop.f32.mrf.mxu0 }
 0x102   : > { %v585_v53 = vmul.f32 2.0, %v527_v63  ;;  %v1823_v63 = vsub.f32 %v646_v17, %v584_v50  ;;  %v737_v40 = vmin.f32 %v735_v8, %v1825_v12 }
 0x103   : > { %v531_v1 = vpop.f32.mrf.mxu0 }
 0x104   : > { %v586_v54 = vmul.f32 2.0, %v531_v1  ;;  %v1827_v62 = vsub.f32 %v646_v17, %v585_v53  ;;  %v717_v33 = vmin.f32 %v715_v59, %v1823_v63 }
 0x105   : > { %v533_v10 = vpop.f32.mrf.mxu0 }
 0x106   : > { %v587_v60 = vmul.f32 2.0, %v533_v10  ;;  %v1829_v13 = vsub.f32 %v651_v35, %v586_v54  ;;  %v736_v10 = vmin.f32 %v734_v56, %v1817_v0 }
 0x107   : > { %v537_v18 = vpop.f32.mrf.mxu0 }
 0x108   : > { %v588_v58 = vmul.f32 2.0, %v537_v18  ;;  %v1835_v29 = vsub.f32 %v651_v35, %v587_v60  ;;  %v738_v42 = vmin.f32 %v736_v10, %v1827_v62 }
 0x109   : > { %v539_v26 = vpop.f32.mrf.mxu0 }
 0x10a   : > { %v589_v6 = vmul.f32 2.0, %v539_v26  ;;  %v1832_v18 = vsub.f32 %v656_v44, %v588_v58  ;;  %v716_v26 = vmin.f32 %v714_v57, %v1819_v3  ;;  %v739_v52 = vmin.f32 %v737_v40, %v1835_v29 }
 0x10b   : > { %v543_v36 = vpop.f32.mrf.mxu0 }
 0x10c   : > { %v590_v7 = vmul.f32 2.0, %v543_v36  ;;  %v1837_v30 = vsub.f32 %v656_v44, %v589_v6  ;;  %v718_v43 = vmin.f32 %v716_v26, %v1829_v13  ;;  %v719_v44 = vmin.f32 %v717_v33, %v1832_v18 }
 0x10d   : > { %v545_v46 = vpop.f32.mrf.mxu0  ;;  %v752_v26 = vlaneseq }
 0x10e   : > { %v591_v14 = vmul.f32 2.0, %v545_v46  ;;  %v1839_v9 = vsub.f32 %v661_v2, %v590_v7  ;;  %v740_v53 = vmin.f32 %v738_v42, %v1837_v30 }
 0x10f   : > { %v549_v55 = vpop.f32.mrf.mxu0  ;;  %v1871_v40 = vshrl.u32 %v752_v26, 7 }
 0x110   : > { %v592_v1 = vmul.f32 2.0, %v549_v55  ;;  %v1847_v45 = vsub.f32 %v661_v2, %v591_v14  ;;  %v720_v54 = vmin.f32 %v718_v43, %v1839_v9 }
 0x111   : > { %v551_v61 = vpop.f32.mrf.mxu0  ;;  %v1876_v43 = vadd.s32 8, %v1871_v40 }
 0x112   : > { %v593_v20 = vmul.f32 2.0, %v551_v61  ;;  %v1842_v36 = vsub.f32 %v666_v11, %v592_v1  ;;  %v741_v60 = vmin.f32 %v739_v52, %v1847_v45  ;;  %v1891_v52 = vadd.s32 48, %v1871_v40 }
 0x113   : > { %v555_v16 = vpop.f32.mrf.mxu0 }
 0x114   : > { %v594_v21 = vmul.f32 2.0, %v555_v16  ;;  %v1850_v46 = vsub.f32 %v666_v11, %v593_v20  ;;  %v721_v56 = vmin.f32 %v719_v44, %v1842_v36  ;;  %v1882_v44 = vadd.s32 24, %v1871_v40 }
 0x115   : > { %v557_v17 = vpop.f32.mrf.mxu0 }
 0x116   : > { %v595_v37 = vmul.f32 2.0, %v557_v17  ;;  %v1852_v47 = vsub.f32 %v671_v41, %v594_v21  ;;  %v742_v6 = vmin.f32 %v740_v53, %v1850_v46  ;;  %v1902_v53 = vadd.s32 56, %v1871_v40 }
 0x117   : > { %v561_v35 = vpop.f32.mrf.mxu0 }
 0x118   : > { %v596_v50 = vmul.f32 2.0, %v561_v35  ;;  %v1858_v57 = vsub.f32 %v671_v41, %v595_v37  ;;  %v722_v7 = vmin.f32 %v720_v54, %v1852_v47  ;;  %v1879_v35 = vadd.s32 16, %v1871_v40 }
 0x119   : > { %v563_v55 = vpop.f32.mrf.mxu0  ;;  %v1905_v54 = vadd.s32 64, %v1871_v40 }
 0x11a   : > { %v1860_v58 = vsub.f32 %v676_v51, %v596_v50  ;;  %v597_v2 = vmul.f32 2.0, %v563_v55  ;;  %v743_v59 = vmin.f32 %v741_v60, %v1858_v57  ;;  %v1885_v50 = vadd.s32 32, %v1871_v40 }
 0x11b   : > { %v1908_v55 = vadd.s32 72, %v1871_v40 }
 0x11c   : > { %v723_v61 = vmin.f32 %v721_v56, %v1860_v58  ;;  %v1866_v8 = vsub.f32 %v676_v51, %v597_v2  ;;  %v1888_v51 = vadd.s32 40, %v1871_v40 }
 0x11e   : > { %v724_v1 = vmin.f32 %v722_v7, %v723_v61  ;;  %v744_v11 = vmin.f32 %v742_v6, %v1866_v8  ;;  %v1927_v61 = vadd.s32 112, %v1871_v40 }
 0x120   : > { %v725_v14 = vrot.slane %v724_v1, 4  ;;  %v745_v16 = vmin.f32 %v743_v59, %v744_v11  ;;  %v1930_v59 = vadd.s32 120, %v1871_v40 }
 0x122   : > { %v726_v10 = vmin.f32 %v724_v1, %v725_v14  ;;  %v746_v20 = vrot.slane %v745_v16, 4 }
 0x124   : > { %v727_v21 = vrot.slane %v726_v10, 2  ;;  %v747_v33 = vmin.f32 %v745_v16, %v746_v20 }
 0x126   : > { %v728_v17 = vmin.f32 %v726_v10, %v727_v21  ;;  %v748_v42 = vrot.slane %v747_v33, 2 }
 0x128   : > { %v729_v37 = vrot.slane %v728_v17, 1  ;;  %v749_v56 = vmin.f32 %v747_v33, %v748_v42 }
 0x12a   : > { %v1873_v41 = vmin.f32 %v728_v17, %v729_v37  ;;  %v750_v1 = vrot.slane %v749_v56, 1 }
 0x12c   : > { %vm769_vm1 = vcmp.eq.f32.partialorder %v1778_v22, %v1873_v41  ;;  %vm771_vm2 = vcmp.eq.f32.partialorder %v1790_v31, %v1873_v41  ;;  %vm773_vm3 = vcmp.eq.f32.partialorder %v1774_v15, %v1873_v41  ;;  %vm775_vm4 = vcmp.eq.f32.partialorder %v1780_v23, %v1873_v41 }
 0x12d   : > { %v1911_v22 = vadd.s32 80, %v1871_v40  ;;  %v1914_v31 = vadd.s32 88, %v1871_v40  ;;  %v1917_v15 = vadd.s32 96, %v1871_v40  ;;  %v1920_v23 = vadd.s32 104, %v1871_v40 }
 0x12e   : > { %v801_v2 = vsel %vm769_vm1, %v1871_v40, 128  ;;  %v803_v60 = vsel %vm771_vm2, %v1876_v43, 128  ;;  %v805_v6 = vsel %vm773_vm3, %v1879_v35, 128  ;;  %v807_v7 = vsel %vm775_vm4, %v1882_v44, 128 }
 0x12f   : > { %vm777_vm5 = vcmp.eq.f32.partialorder %v1784_v25, %v1873_v41  ;;  %vm779_vm6 = vcmp.eq.f32.partialorder %v1796_v34, %v1873_v41  ;;  %vm781_vm7 = vcmp.eq.f32.partialorder %v1802_v39, %v1873_v41  ;;  %vm783_vm8 = vcmp.eq.f32.partialorder %v1812_v49, %v1873_v41 }
 0x130   : > { %vm785_vm9 = vcmp.eq.f32.partialorder %v1819_v3, %v1873_v41  ;;  %vm787_vm10 = vcmp.eq.f32.partialorder %v1823_v63, %v1873_v41  ;;  %vm789_vm11 = vcmp.eq.f32.partialorder %v1829_v13, %v1873_v41  ;;  %vm833_vm12 = vcmp.lt.s32.totalorder %v801_v2, %v805_v6 }
 0x131   : > { %vm835_vm13 = vcmp.lt.s32.totalorder %v803_v60, %v807_v7  ;;  %v809_v25 = vsel %vm777_vm5, %v1885_v50, 128  ;;  %v811_v34 = vsel %vm779_vm6, %v1888_v51, 128  ;;  %v834_v11 = vsel %vm833_vm12, %v801_v2, %v805_v6 }
 0x132   : > { %v836_v14 = vsel %vm835_vm13, %v803_v60, %v807_v7  ;;  %vm791_vm14 = vcmp.eq.f32.partialorder %v1832_v18, %v1873_v41  ;;  %vm793_vm15 = vcmp.eq.f32.partialorder %v1839_v9, %v1873_v41  ;;  %vm837_vm0 = vcmp.lt.s32.totalorder %v834_v11, %v809_v25 }
 0x133   : > { %vm839_vm1 = vcmp.lt.s32.totalorder %v836_v14, %v811_v34  ;;  %v813_v16 = vsel %vm781_vm7, %v1891_v52, 128  ;;  %v815_v10 = vsel %vm783_vm8, %v1902_v53, 128  ;;  %v838_v20 = vsel %vm837_vm0, %v834_v11, %v809_v25 }
 0x134   : > { %v840_v21 = vsel %vm839_vm1, %v836_v14, %v811_v34  ;;  %vm795_vm2 = vcmp.eq.f32.partialorder %v1842_v36, %v1873_v41  ;;  %vm797_vm3 = vcmp.eq.f32.partialorder %v1852_v47, %v1873_v41  ;;  %vm841_vm4 = vcmp.lt.s32.totalorder %v838_v20, %v813_v16 }
 0x135   : > { %vm843_vm5 = vcmp.lt.s32.totalorder %v840_v21, %v815_v10  ;;  %v817_v39 = vsel %vm785_vm9, %v1905_v54, 128  ;;  %v819_v49 = vsel %vm787_vm10, %v1908_v55, 128  ;;  %v842_v17 = vsel %vm841_vm4, %v838_v20, %v813_v16 }
 0x136   : > { %v844_v33 = vsel %vm843_vm5, %v840_v21, %v815_v10  ;;  %vm799_vm6 = vcmp.eq.f32.partialorder %v1860_v58, %v1873_v41  ;;  %vm845_vm7 = vcmp.lt.s32.totalorder %v842_v17, %v817_v39  ;;  %v1974_v37 = vmin.f32 %v749_v56, %v750_v1 }
 0x137   : > { %vm847_vm8 = vcmp.lt.s32.totalorder %v844_v33, %v819_v49  ;;  %v821_v3 = vsel %vm789_vm11, %v1911_v22, 128  ;;  %v823_v63 = vsel %vm791_vm14, %v1914_v31, 128  ;;  %v846_v42 = vsel %vm845_vm7, %v842_v17, %v817_v39 }
 0x138   : > { %v848_v2 = vsel %vm847_vm8, %v844_v33, %v819_v49  ;;  %v825_v58 = vsel %vm793_vm15, %v1917_v15, 128  ;;  %v827_v56 = vsel %vm795_vm2, %v1920_v23, 128  ;;  %vm849_vm9 = vcmp.lt.s32.totalorder %v846_v42, %v821_v3 }
 0x139   : > { %vm851_vm10 = vcmp.lt.s32.totalorder %v848_v2, %v823_v63  ;;  %v829_v13 = vsel %vm797_vm3, %v1927_v61, 128  ;;  %v831_v18 = vsel %vm799_vm6, %v1930_v59, 128  ;;  %v850_v60 = vsel %vm849_vm9, %v846_v42, %v821_v3 }
 0x13a   : > { %v852_v6 = vsel %vm851_vm10, %v848_v2, %v823_v63  ;;  %vm853_vm11 = vcmp.lt.s32.totalorder %v850_v60, %v825_v58  ;;  %vm770_vm13 = vcmp.eq.f32.partialorder %v1786_v27, %v1974_v37  ;;  %vm774_vm14 = vcmp.eq.f32.partialorder %v1776_v19, %v1974_v37 }
 0x13b   : > { %vm855_vm12 = vcmp.lt.s32.totalorder %v852_v6, %v827_v56  ;;  %v854_v9 = vsel %vm853_vm11, %v850_v60, %v825_v58  ;;  %vm772_vm15 = vcmp.eq.f32.partialorder %v1792_v32, %v1974_v37  ;;  %vm776_vm0 = vcmp.eq.f32.partialorder %v1782_v24, %v1974_v37 }
 0x13c   : > { %v856_v36 = vsel %vm855_vm12, %v852_v6, %v827_v56  ;;  %vm857_vm1 = vcmp.lt.s32.totalorder %v854_v9, %v829_v13  ;;  %v802_v7 = vsel %vm770_vm13, %v1871_v40, 128  ;;  %v806_v1 = vsel %vm774_vm14, %v1879_v35, 128 }
 0x13d   : > { %vm859_vm2 = vcmp.lt.s32.totalorder %v856_v36, %v831_v18  ;;  %v858_v47 = vsel %vm857_vm1, %v854_v9, %v829_v13  ;;  %vm778_vm4 = vcmp.eq.f32.partialorder %v1788_v28, %v1974_v37  ;;  %v804_v19 = vsel %vm772_vm15, %v1876_v43, 128 }
 0x13e   : > { %v860_v41 = vsel %vm859_vm2, %v856_v36, %v831_v18  ;;  %v808_v27 = vsel %vm776_vm0, %v1882_v44, 128  ;;  %vm780_vm5 = vcmp.eq.f32.partialorder %v1800_v38, %v1974_v37  ;;  %vm782_vm6 = vcmp.eq.f32.partialorder %v1810_v48, %v1974_v37 }
 0x13f   : > { %vm861_vm3 = vcmp.lt.s32.totalorder %v858_v47, %v860_v41  ;;  %vm784_vm7 = vcmp.eq.f32.partialorder %v1817_v0, %v1974_v37  ;;  %vm786_vm8 = vcmp.eq.f32.partialorder %v1825_v12, %v1974_v37  ;;  %vm872_vm9 = vcmp.lt.s32.totalorder %v802_v7, %v806_v1 }
 0x140   : > { %v862_v32 = vsel %vm861_vm3, %v858_v47, %v860_v41  ;;  %vm788_vm10 = vcmp.eq.f32.partialorder %v1827_v62, %v1974_v37  ;;  %v810_v28 = vsel %vm778_vm4, %v1885_v50, 128  ;;  %v873_v25 = vsel %vm872_vm9, %v802_v7, %v806_v1 }
 0x141   : > { %v863_v24 = vrot.slane %v862_v32, 4  ;;  %vm874_vm11 = vcmp.lt.s32.totalorder %v804_v19, %v808_v27  ;;  %vm790_vm12 = vcmp.eq.f32.partialorder %v1835_v29, %v1974_v37  ;;  %v812_v38 = vsel %vm780_vm5, %v1888_v51, 128 }
 0x142   : > { %v875_v48 = vsel %vm874_vm11, %v804_v19, %v808_v27  ;;  %vm876_vm13 = vcmp.lt.s32.totalorder %v873_v25, %v810_v28  ;;  %vm792_vm14 = vcmp.eq.f32.partialorder %v1837_v30, %v1974_v37  ;;  %v814_v34 = vsel %vm782_vm6, %v1891_v52, 128 }
 0x143   : > { %v877_v11 = vsel %vm876_vm13, %v873_v25, %v810_v28  ;;  %vm878_vm15 = vcmp.lt.s32.totalorder %v875_v48, %v812_v38  ;;  %vm864_vm0 = vcmp.lt.s32.totalorder %v862_v32, %v863_v24  ;;  %v816_v14 = vsel %vm784_vm7, %v1902_v53, 128 }
 0x144   : > { %v879_v16 = vsel %vm878_vm15, %v875_v48, %v812_v38  ;;  %vm880_vm1 = vcmp.lt.s32.totalorder %v877_v11, %v814_v34  ;;  %vm794_vm2 = vcmp.eq.f32.partialorder %v1847_v45, %v1974_v37  ;;  %v818_v10 = vsel %vm786_vm8, %v1905_v54, 128 }
 0x145   : > { %v881_v20 = vsel %vm880_vm1, %v877_v11, %v814_v34  ;;  %vm882_vm3 = vcmp.lt.s32.totalorder %v879_v16, %v816_v14  ;;  %vm796_vm4 = vcmp.eq.f32.partialorder %v1850_v46, %v1974_v37  ;;  %v820_v0 = vsel %vm788_vm10, %v1908_v55, 128 }
 0x146   : > { %v883_v21 = vsel %vm882_vm3, %v879_v16, %v816_v14  ;;  %vm884_vm5 = vcmp.lt.s32.totalorder %v881_v20, %v818_v10  ;;  %v865_v39 = vsel %vm864_vm0, %v862_v32, %v863_v24  ;;  %v822_v49 = vsel %vm790_vm12, %v1911_v22, 128 }
 0x147   : > { %v885_v12 = vsel %vm884_vm5, %v881_v20, %v818_v10  ;;  %vm886_vm6 = vcmp.lt.s32.totalorder %v883_v21, %v820_v0  ;;  %vm798_vm7 = vcmp.eq.f32.partialorder %v1858_v57, %v1974_v37  ;;  %v824_v17 = vsel %vm792_vm14, %v1914_v31, 128 }
 0x148   : > { %v887_v62 = vsel %vm886_vm6, %v883_v21, %v820_v0  ;;  %vm888_vm8 = vcmp.lt.s32.totalorder %v885_v12, %v822_v49  ;;  %vm800_vm9 = vcmp.eq.f32.partialorder %v1866_v8, %v1974_v37  ;;  %v826_v29 = vsel %vm794_vm2, %v1917_v15, 128 }
 0x149   : > { %v889_v33 = vsel %vm888_vm8, %v885_v12, %v822_v49  ;;  %vm890_vm10 = vcmp.lt.s32.totalorder %v887_v62, %v824_v17  ;;  %v866_v3 = vrot.slane %v865_v39, 2  ;;  %v828_v57 = vsel %vm796_vm4, %v1920_v23, 128 }
 0x14a   : > { %v891_v30 = vsel %vm890_vm10, %v887_v62, %v824_v17  ;;  %vm892_vm11 = vcmp.lt.s32.totalorder %v889_v33, %v826_v29  ;;  %v830_v63 = vsel %vm798_vm7, %v1927_v61, 128  ;;  %v832_v8 = vsel %vm800_vm9, %v1930_v59, 128 }
 0x14b   : > { %v893_v42 = vsel %vm892_vm11, %v889_v33, %v826_v29  ;;  %vm894_vm12 = vcmp.lt.s32.totalorder %v891_v30, %v828_v57  ;;  %vm867_vm15 = vcmp.lt.s32.totalorder %v865_v39, %v866_v3  ;;  %v1536_v6 = vmov 1966171168  }
 0x14c   : > { %v895_v2 = vsel %vm894_vm12, %v891_v30, %v828_v57  ;;  %vm896_vm13 = vcmp.lt.s32.totalorder %v893_v42, %v830_v63  ;;  %v868_v13 = vsel %vm867_vm15, %v865_v39, %v866_v3  ;;  %v1080_v9 = vunpack.c.l.s4 %v1536_v6 }
 0x14d   : > { %v897_v45 = vsel %vm896_vm13, %v893_v42, %v830_v63  ;;  %vm898_vm14 = vcmp.lt.s32.totalorder %v895_v2, %v832_v8  ;;  %v869_v46 = vrot.slane %v868_v13, 1  ;;  %v1537_v19 = vmov 1.0  }
 0x14e   : > { %v899_v58 = vsel %vm898_vm14, %v895_v2, %v832_v8  ;;  %v1081_v7 = vunpack.c.0.s8 %v1080_v9  ;;  %vm1095_vm13 = vcmp.lt.s32.totalorder %v752_v26, 256  ;;  %v339_v26 = vld [vmem:[%s2236_s2] sm:$0xff] }
 0x14f   : > { %vm900_vm0 = vcmp.lt.s32.totalorder %v897_v45, %v899_v58  ;;  %vm870_vm3 = vcmp.lt.s32.totalorder %v868_v13, %v869_v46 }
 0x150   : > { %v901_v56 = vsel %vm900_vm0, %v897_v45, %v899_v58  ;;  %v2066_v41 = vsel %vm870_vm3, %v868_v13, %v869_v46  ;;  %v1084_v27 = vsub.s32 %v1081_v7, %v1871_v40 }
 0x151   : > { %v902_v18 = vrot.slane %v901_v56, 4  ;;  %vm941_vm6 = vcmp.eq.s32.totalorder %v1930_v59, %v2066_v41  ;;  %vm939_vm8 = vcmp.eq.s32.totalorder %v1927_v61, %v2066_v41  ;;  %vm937_vm10 = vcmp.eq.s32.totalorder %v1920_v23, %v2066_v41 }
 0x152   : > { %vm935_vm12 = vcmp.eq.s32.totalorder %v1917_v15, %v2066_v41  ;;  %vm933_vm15 = vcmp.eq.s32.totalorder %v1914_v31, %v2066_v41  ;;  %vm929_vm3 = vcmp.eq.s32.totalorder %v1908_v55, %v2066_v41 }
 0x153   : > { %vm903_vm1 = vcmp.lt.s32.totalorder %v901_v56, %v902_v18 }
 0x154   : > { %v904_v37 = vsel %vm903_vm1, %v901_v56, %v902_v18  ;;  %vm931_vm1 = vcmp.eq.s32.totalorder %v1911_v22, %v2066_v41 }
 0x155   : > { %v905_v60 = vrot.slane %v904_v37, 2 }
 0x157   : > { %vm906_vm2 = vcmp.lt.s32.totalorder %v904_v37, %v905_v60 }
 0x158   : > { %v907_v36 = vsel %vm906_vm2, %v904_v37, %v905_v60 }
 0x159   : > { %v908_v47 = vrot.slane %v907_v36, 1 }
 0x15b   : > { %vm909_vm4 = vcmp.lt.s32.totalorder %v907_v36, %v908_v47 }
 0x15c   : > { %v2068_v1 = vsel %vm909_vm4, %v907_v36, %v908_v47 }
 0x15d   : > { %vm942_vm5 = vcmp.eq.s32.totalorder %v1930_v59, %v2068_v1  ;;  %vm940_vm7 = vcmp.eq.s32.totalorder %v1927_v61, %v2068_v1  ;;  %vm938_vm9 = vcmp.eq.s32.totalorder %v1920_v23, %v2068_v1  ;;  %v1078_v59 = vcombine.low %v2066_v41, %v2068_v1 }
 0x15e   : > { %1353 = vmatprep.subr.msk.mxu1 %vm942_vm5, %v1537_v19  ;;  %vm936_vm11 = vcmp.eq.s32.totalorder %v1917_v15, %v2068_v1  ;;  %vm934_vm14 = vcmp.eq.s32.totalorder %v1914_v31, %v2068_v1  ;;  %vm932_vm0 = vcmp.eq.s32.totalorder %v1911_v22, %v2068_v1  ;;  %vm930_vm2 = vcmp.eq.s32.totalorder %v1908_v55, %v2068_v1 }
 0x15f   : > { %1354 = vmatpush1.msk.msra.mxu1 %vm941_vm6, %v1537_v19  ;;  %v1085_v61 = vrot.slane %v1078_v59, %v1084_v27  ;;  %vm928_vm4 = vcmp.eq.s32.totalorder %v1905_v54, %v2068_v1  ;;  %vm927_vm5 = vcmp.eq.s32.totalorder %v1905_v54, %v2066_v41  ;;  %vm926_vm6 = vcmp.eq.s32.totalorder %v1902_v53, %v2068_v1 }
 0x160   : > { %1355 = vmatprep.subr.msk.mxu1 %vm940_vm7, %v1537_v19  ;;  %vm925_vm7 = vcmp.eq.s32.totalorder %v1902_v53, %v2066_v41 }
 0x161   : > { %1356 = vmatpush1.msk.msra.mxu1 %vm939_vm8, %v1537_v19  ;;  %v1092_v32 = vrot.slane %v1085_v61, %v1084_v27  ;;  %vm924_vm8 = vcmp.eq.s32.totalorder %v1891_v52, %v2068_v1 }
 0x162   : > { %1357 = vmatprep.subr.msk.mxu1 %vm938_vm9, %v1537_v19  ;;  %vm923_vm9 = vcmp.eq.s32.totalorder %v1891_v52, %v2066_v41 }
 0x163   : > { %1358 = vmatpush1.msk.msra.mxu1 %vm937_vm10, %v1537_v19  ;;  %1097 = vst.msk [vmem:[%s274_s28] sm:$0x3] %vm1095_vm13, %v1092_v32  ;;  %vm922_vm10 = vcmp.eq.s32.totalorder %v1888_v51, %v2068_v1  ;;  %vm919_vm13 = vcmp.eq.s32.totalorder %v1885_v50, %v2066_v41 }
 0x164   : > { %1359 = vmatprep.subr.msk.mxu1 %vm936_vm11, %v1537_v19  ;;  %vm921_vm11 = vcmp.eq.s32.totalorder %v1888_v51, %v2066_v41 }
 0x165   : > { %1360 = vmatpush1.msk.msra.mxu1 %vm935_vm12, %v1537_v19  ;;  %vm920_vm12 = vcmp.eq.s32.totalorder %v1885_v50, %v2068_v1 }
 0x166   : > { %1361 = vmatprep.subr.msk.mxu1 %vm934_vm14, %v1537_v19  ;;  %vm918_vm14 = vcmp.eq.s32.totalorder %v1882_v44, %v2068_v1 }
 0x167   : > { %1362 = vmatpush1.msk.msra.mxu1 %vm933_vm15, %v1537_v19  ;;  %vm917_vm15 = vcmp.eq.s32.totalorder %v1882_v44, %v2066_v41 }
 0x168   : > { %1363 = vmatprep.subr.msk.mxu1 %vm932_vm0, %v1537_v19  ;;  %vm916_vm0 = vcmp.eq.s32.totalorder %v1879_v35, %v2068_v1 }
 0x169   : > { %1364 = vmatpush1.msk.msra.mxu1 %vm931_vm1, %v1537_v19  ;;  %vm915_vm1 = vcmp.eq.s32.totalorder %v1879_v35, %v2066_v41 }
 0x16a   : > { %1365 = vmatprep.subr.msk.mxu1 %vm930_vm2, %v1537_v19  ;;  %vm914_vm2 = vcmp.eq.s32.totalorder %v1876_v43, %v2068_v1 }
 0x16b   : > { %1366 = vmatpush1.msk.msra.mxu1 %vm929_vm3, %v1537_v19  ;;  %vm913_vm3 = vcmp.eq.s32.totalorder %v1876_v43, %v2066_v41 }
 0x16c   : > { %1367 = vmatprep.subr.msk.mxu1 %vm928_vm4, %v1537_v19  ;;  %vm912_vm4 = vcmp.eq.s32.totalorder %v1871_v40, %v2068_v1 }
 0x16d   : > { %1368 = vmatpush1.msk.msra.mxu1 %vm927_vm5, %v1537_v19  ;;  %vm911_vm5 = vcmp.eq.s32.totalorder %v1871_v40, %v2066_v41 }
 0x16e   : > { %1369 = vmatprep.subr.msk.mxu1 %vm926_vm6, %v1537_v19 }
 0x16f   : > { %1370 = vmatpush1.msk.msra.mxu1 %vm925_vm7, %v1537_v19 }
 0x170   : > { %1371 = vmatprep.subr.msk.mxu1 %vm924_vm8, %v1537_v19 }
 0x171   : > { %1372 = vmatpush1.msk.msra.mxu1 %vm923_vm9, %v1537_v19 }
 0x172   : > { %1373 = vmatprep.subr.msk.mxu1 %vm922_vm10, %v1537_v19 }
 0x173   : > { %1374 = vmatpush1.msk.msra.mxu1 %vm921_vm11, %v1537_v19 }
 0x174   : > { %1375 = vmatprep.subr.msk.mxu1 %vm920_vm12, %v1537_v19 }
 0x175   : > { %1376 = vmatpush1.msk.msra.mxu1 %vm919_vm13, %v1537_v19 }
 0x176   : > { %1377 = vmatprep.subr.msk.mxu1 %vm918_vm14, %v1537_v19 }
 0x177   : > { %1378 = vmatpush1.msk.msra.mxu1 %vm917_vm15, %v1537_v19 }
 0x178   : > { %1379 = vmatprep.subr.msk.mxu1 %vm916_vm0, %v1537_v19 }
 0x179   : > { %1380 = vmatpush1.msk.msra.mxu1 %vm915_vm1, %v1537_v19 }
 0x17a   : > { %1381 = vmatprep.subr.msk.mxu1 %vm914_vm2, %v1537_v19 }
 0x17b   : > { %1382 = vmatpush1.msk.msra.mxu1 %vm913_vm3, %v1537_v19 }
 0x17c   : > { %1383 = vmatprep.subr.msk.mxu1 %vm912_vm4, %v1537_v19 }
 0x17d   : > { %1384 = vmatpush1.msk.msra.mxu1 %vm911_vm5, %v1537_v19 }
 0x17e   : > { %1072 = vmatmul.mubr.f32.vlgmr.msra.gmra.mxu1 %v339_v26 }
 0x23e   : > { %v1073_v43 = vpop.f32.mrf.mxu1 }
 0x23f   : > { %v1100_v35 = vsub.f32 %v1073_v43, %v1649_v5  ;;  %1098 = vst [vmem:[%s313_s15] sm:$0xff] %v1073_v43 }
 0x240   : > { %v1075_v44 = vpop.f32.mrf.mxu1 }
 0x241   : > { %1099 = vst [vmem:[%s313_s15 + $0x8] sm:$0xff] %v1075_v44  ;;  %v1101_v50 = vsub.f32 %v1075_v44, %v1647_v4  ;;  %v1102_v40 = vmul.f32 %v1100_v35, %v1100_v35  ;;  %s1462_s15 = scalar_lea.vmem %s1461_s14, 64 }
 0x242   : > { %p1464_p2 = scmp.lt.s32.totalorder %s1462_s15, %s1456_s8 }
 0x243   : > { %v1103_v51 = vmul.f32 %v1101_v50, %v1101_v50 }
 0x244   : > { %p1465_p3 = por %p1464_p2, %p1463_p1 }
 0x245   : > { %v1104_v52 = vadd.f32 %v1103_v51, %v1102_v40 }
 0x246   : > { %p1466_p5 = pnand %p1465_p3, %p1459_p0 }
 0x247   : > { %1105 = vadd.xlane.f32.xlu0 %v1104_v52 }
 0x248   : > { %1469 = shalt.err (!%p1466_p5)
}
 0x249   : > { %s1470_s24 = scalar_lea.hbm %s1147_s19, 32  ;;  %s1474_s28 = scalar_lea.hbm %s2238_s4, 64 }
 0x24a   : > { %p1471_p6 = scmp.ne.s32.totalorder %s1147_s19, %s1470_s24  ;;  %p1475_p10 = scmp.lt.s32.totalorder %s1147_s19, %s2238_s4 }
 0x24b   : > { %p1476_p11 = scmp.lt.s32.totalorder %s1474_s28, %s1470_s24 }
 0x24c   : > { %p1472_p7 = pnand %p1471_p6, %p1614_p4 }
 0x24d   : > { %p1477_p12 = por %p1476_p11, %p1475_p10 }
 0x24e   : > { %p1473_p9 = pneg %p1472_p7 }
 0x250   : > { %p1478_p13 = pnand %p1477_p12, %p1473_p9 }
 0x252   : > { %1481 = shalt.err (!%p1478_p13)
}
 0x253   : > { %1395 = dma.vmem_to_hbm [thread:$0]  (%p1614_p4), %s1150_s12, 32, %s1147_s19, %s1118_s30   ;;  %vm1115_vm6 = vcmask 0  }
 0x254   : > { %s320_s13 = scalar_lea.vmem %s2240_s6, %s1633_s11 }
 0x2d0   : > { %v1106_v4 = vpop.xlane.xlu0 %1105 }
 0x2d1   : > { %v1107_v5 = vrot.slane %v1106_v4, 4 }
 0x2d3   : > { %v1108_v53 = vadd.f32 %v1107_v5, %v1106_v4 }
 0x2d5   : > { %v1109_v54 = vrot.slane %v1108_v53, 2 }
 0x2d7   : > { %v1110_v55 = vadd.f32 %v1109_v54, %v1108_v53 }
 0x2d9   : > { %v1111_v22 = vrot.slane %v1110_v55, 1 }
 0x2db   : > { %v1112_v31 = vadd.f32 %v1111_v22, %v1110_v55 }
 0x2dd   : > { %1393 = vpush %v1112_v31 }
 0x30e   : > { %s1394_s14 = spop %1393 }
 0x30f   : > { %v1114_v15 = vstv %s1394_s14 }
 0x310   : > { %1116 = vst.msk [vmem:[%s320_s13] sm:$0x1] %vm1115_vm6, %v1114_v15 }
 0x311 PF: > { %p1401_p4 = scmp.ge.s32.totalorder %s1532_s26, 2  ;;  %s1168_s7 = sand.u32 1, %s1512_s21  }
 0x312   : > { %s1169_s19 = scalar_lea.sflag [#allocation3], %s1168_s7 }
 0x313   : > { %p1398_p0 = pnand %p1401_p4, %p1621_p8 }
 0x315   : > { %p1399_p1 = pneg %p1398_p0 }
 0x317   : > { %1507 = dma.done.wait (%p1399_p1), %s1169_s19, 32  }
 0x318   : > { %1509 = vsyncadd (%p1399_p1), %s1169_s19, 4294967264  ;;  %s20_s26 = sadd.s32 1, %s1532_s26   ;;  %s2243_s21 = smov %s1516_s22 }
 0x319   : > { %p17_p2 = scmp.ge.s32.totalorder %s20_s26, 4   ;;  %s2244_s22 = smov %s1520_s23 }
 0x31a   : > { %s2245_s23 = smov %s1627_s10  ;;  %s2246_s24 = smov %s1528_s25 }
 0x31b   : > { %s2247_s25 = smov %s2249_s29  ;;  %19 = sbr.rel (!%p17_p2) target bundleno = 4 (0x4), region = 95 }
 0x320   :  { %1195 = vsyncpa [#allocation3], 1 }
 0x321   :  { %1197 = vsyncpa [#allocation3 + $0x1], 1 }

</bundles_post_ra>
